<compile_context>
chip_gen: v7x
topology: tpu7x:2x2x1
jax: 0.10.0
libtpu: 0.0.40
codegen_flags: <defaults>
</compile_context>

<pallas_src>
import functools

import jax
import jax.numpy as jnp
from jax.experimental import pallas as pl
from jax.experimental.pallas import tpu as pltpu


def _round_up(x: int, m: int) -> int:
    return ((x + m - 1) // m) * m


def _mtlr_nll_kernel(logits_ref, target_ref, out_ref, acc_ref, *,
                     batch_size: int, tile_n: int, blocks_per_split: int):
    split = pl.program_id(0)          # parallel axis (2 TCs on v7x)
    j = pl.program_id(1)              # arbitrary (reduction) axis

    @pl.when(j == 0)
    def _init():
        acc_ref[...] = jnp.zeros_like(acc_ref)

    x = logits_ref[...]                          # (T, TILE) f32
    t = target_ref[...].astype(jnp.float32)      # (T, TILE) hard 0/1 mask

    # Normalizer: numerically stable logsumexp over the time-bin axis
    # (sublanes; T is small so this is a handful of vreg adds per lane-col).
    m = jnp.max(x, axis=0, keepdims=True)                              # (1, TILE)
    norm = jnp.log(jnp.sum(jnp.exp(x - m), axis=0, keepdims=True)) + m

    # Censored branch: reference masked_logsumexp — shift by the *masked* max
    # clamped at 0 and multiply the exponent by the mask (no inf*0 -> NaN,
    # no underflow when the masked logits sit far below the row max).
    xt = x * t
    m_mask = jnp.maximum(jnp.max(xt, axis=0, keepdims=True), 0.0)      # (1, TILE)
    e2 = jnp.exp((x - m_mask) * t) * t
    mlse = jnp.log(jnp.sum(e2, axis=0, keepdims=True)) + m_mask

    # Uncensored branch: exact masked linear term (kept for exactness; for
    # one-hot targets mlse == lin only up to exp/log rounding).
    lin = jnp.sum(xt, axis=0, keepdims=True)
    censored = jnp.sum(t, axis=0, keepdims=True) > 1.0

    per_sample = jnp.where(censored, mlse, lin) - norm                  # (1, TILE)

    # Mask lanes beyond the true batch: ragged last block + overhang blocks of
    # the second split.  Must stay a select — those lanes hold undefined data.
    blk = split * blocks_per_split + j
    col = jax.lax.broadcasted_iota(jnp.int32, (1, tile_n), 1) + blk * tile_n
    per_sample = jnp.where(col < batch_size, per_sample, 0.0)

    # Lane-wise accumulation (pure VPU add each step).
    acc_ref[...] += per_sample

    @pl.when(j == pl.num_programs(1) - 1)
    def _finalize():
        # Single cross-lane reduce per split; broadcast into a lane-dense
        # (1, 128) output block (unmasked vst).
        out_ref[...] = jnp.full((1, 128), jnp.sum(acc_ref[...]), jnp.float32)


@functools.partial(
    jax.jit, static_argnames=("order", "reduction", "tile_n", "num_splits"))
def likelihood_mtlr(logits, target, weight, *, c1=0.01, order="2",
                    reduction="mean", tile_n=8192, num_splits=2):
    """Pallas implementation of LikelihoodMTLR.forward (single-weight model).

    logits, target: (N, T);  weight: the model's weight tensor (T, D).
    """
    assert reduction in ("mean", "sum"), "reduction must be 'mean' or 'sum'"
    if order not in ("1", "2", "21"):
        raise ValueError("Order must be one of '1', '2', '21'")
    n, t_bins = logits.shape

    # Exactly one fused layout pass per array (transpose + cast); no padding.
    logits_t = jnp.transpose(logits).astype(jnp.float32)    # (T, N) f32
    target_t = jnp.transpose(target).astype(jnp.int8)       # (T, N) 0/1 int8

    tile = max(128, min(_round_up(int(tile_n), 128), _round_up(n, 128)))
    nb = (n + tile - 1) // tile                    # total batch blocks
    bpc = (nb + num_splits - 1) // num_splits      # blocks per split
    last_blk = nb - 1

    def in_map(s, j):
        # Clamp overhang blocks of the last split onto the final real block;
        # their lanes are fully masked in-kernel so the duplicate is harmless.
        return (0, jnp.minimum(s * bpc + j, last_blk))

    kernel = functools.partial(_mtlr_nll_kernel, batch_size=n, tile_n=tile,
                               blocks_per_split=bpc)

    partials = pl.pallas_call(
        kernel,
        out_shape=jax.ShapeDtypeStruct((1, 128 * num_splits), jnp.float32),
        grid_spec=pltpu.PrefetchScalarGridSpec(
            num_scalar_prefetch=0,
            grid=(num_splits, bpc),
            in_specs=[
                pl.BlockSpec((t_bins, tile), in_map),
                pl.BlockSpec((t_bins, tile), in_map),
            ],
            out_specs=pl.BlockSpec((1, 128), lambda s, j: (0, s)),
            scratch_shapes=[pltpu.VMEM((1, tile), jnp.float32)],
        ),
        compiler_params=pltpu.CompilerParams(
            dimension_semantics=("parallel", "arbitrary"),
            vmem_limit_bytes=32 * 1024 * 1024),
    )(logits_t, target_t)

    nll = -jnp.sum(partials.reshape(num_splits, 128)[:, 0])
    if reduction == "mean":
        nll = nll / n

    # Weight regularizer in plain JAX — (T, D) is tiny, not worth a kernel
    # input stream.
    # TODO(synk): models with multiple 'weight' parameters should sum this
    # regularizer over every weight tensor (this wrapper takes a single one).
    w = weight.astype(jnp.float32)
    if order == "1":
        reg = jnp.sum(jnp.abs(w))
    elif order == "2":
        reg = jnp.sum(w * w)
    else:  # "21"
        reg = jnp.sum(jnp.sqrt(jnp.sum(w * w, axis=1)))
    return nll + (c1 / 2.0) * reg


def _reference(logits, target, weight, *, c1=0.01, order="2", reduction="mean"):
    """Pure-JAX mirror of the PyTorch forward for correctness checking."""
    row_sum = jnp.sum(target, axis=1)
    censored = row_sum > 1.0
    masked = logits * target
    max_val = jnp.maximum(jnp.max(masked, axis=-1), 0.0)
    mlse = jnp.log(jnp.sum(jnp.exp((logits - max_val[:, None]) * target)
                           * target, axis=-1)) + max_val
    lin = jnp.sum(masked, axis=-1)
    nll_censored = jnp.sum(jnp.where(censored, mlse, 0.0))
    nll_uncensored = jnp.sum(jnp.where(~censored, lin, 0.0))
    norm = jnp.sum(jax.nn.logsumexp(logits, axis=1))
    nll_total = -(nll_censored + nll_uncensored - norm)
    if reduction == "mean":
        nll_total = nll_total / logits.shape[0]
    if order == "2":
        reg = jnp.sum(weight ** 2)
    elif order == "1":
        reg = jnp.sum(jnp.abs(weight))
    else:
        reg = jnp.sum(jnp.sqrt(jnp.sum(weight ** 2, axis=1)))
    return nll_total + c1 / 2.0 * reg


if __name__ == "__main__":
    T, D = 32, 16
    idx = jnp.arange(T)
    root = jax.random.PRNGKey(0)
    k1, k2, k3, k4, k5, k6 = jax.random.split(root, 6)

    # --- test 1: tiny batch (single ragged block, heavy masking) -------------
    N = 8
    logits = jax.random.normal(k1, (N, T), dtype=jnp.float32)
    event = jnp.array([3, 10, 20, 30, 5, 12, 18, 25])
    is_cens = jnp.array([1, 1, 1, 1, 0, 0, 0, 0])
    target = jnp.where(is_cens[:, None] == 1,
                       (idx[None, :] >= event[:, None]),
                       (idx[None, :] == event[:, None])).astype(jnp.float32)
    weight = 0.1 * jax.random.normal(k2, (T, D), dtype=jnp.float32)

    out = jax.block_until_ready(
        likelihood_mtlr(logits, target, weight, c1=0.01, order="2",
                        reduction="mean"))
    ref = _reference(logits, target, weight, c1=0.01, order="2",
                     reduction="mean")
    assert jnp.allclose(out, ref, rtol=1e-5, atol=1e-5), (out, ref)

    # --- test 2: larger batch, small tiles -> multi-block accumulation per
    #             split + ragged last block + both parallel splits active -----
    N2 = 300
    logits2 = jax.random.normal(k3, (N2, T), dtype=jnp.float32)
    event2 = jax.random.randint(k4, (N2,), 0, T)
    cens2 = jax.random.bernoulli(k5, 0.4, (N2,))
    target2 = jnp.where(cens2[:, None],
                        (idx[None, :] >= event2[:, None]),
                        (idx[None, :] == event2[:, None])).astype(jnp.float32)
    weight2 = 0.1 * jax.random.normal(k6, (T, D), dtype=jnp.float32)

    out2 = jax.block_until_ready(
        likelihood_mtlr(logits2, target2, weight2, c1=0.05, order="21",
                        reduction="sum", tile_n=128))
    ref2 = _reference(logits2, target2, weight2, c1=0.05, order="21",
                      reduction="sum")
    assert jnp.allclose(out2, ref2, rtol=1e-4, atol=1e-4), (out2, ref2)

    # --- test 3: default tile (clamped to the batch), L1 regularizer ---------
    out3 = jax.block_until_ready(
        likelihood_mtlr(logits2, target2, weight2, c1=0.02, order="1",
                        reduction="mean"))
    ref3 = _reference(logits2, target2, weight2, c1=0.02, order="1",
                      reduction="mean")
    assert jnp.allclose(out3, ref3, rtol=1e-5, atol=1e-5), (out3, ref3)

    print("KERNEL_OK")
</pallas_src>

<mosaic_0001>
module attributes {stable_mosaic.version = 11 : i64} {
  func.func @_mtlr_nll_kernel(%arg0: i32, %arg1: i32, %arg2: memref<32x128xf32, #tpu.memory_space<vmem>>, %arg3: memref<32x128xi8, #tpu.memory_space<vmem>>, %arg4: memref<1x128xf32, #tpu.memory_space<vmem>>, %arg5: memref<1x128xf32, #tpu.memory_space<vmem>>) attributes {dimension_semantics = [#tpu.dimension_semantics<parallel>, #tpu.dimension_semantics<arbitrary>], iteration_bounds = array<i64: 2, 1>, scalar_prefetch = 0 : i64, scratch_operands = 1 : i64, tpu.core_type = #tpu.core_type<tc>, window_params = [{transform_indices = @transform_0, window_bounds = array<i64: 32, 128>}, {transform_indices = @transform_1, window_bounds = array<i64: 32, 128>}, {transform_indices = @transform_2, window_bounds = array<i64: 1, 128>}]} {
    %c0_i32 = arith.constant 0 : i32
    %0 = arith.cmpi eq, %arg1, %c0_i32 : i32
    %1 = arith.extui %0 : i1 to i32
    %c0_i32_0 = arith.constant 0 : i32
    %2 = arith.cmpi ne, %1, %c0_i32_0 : i32
    scf.if %2 {
      %cst_18 = arith.constant 0.000000e+00 : f32
      %53 = vector.broadcast %cst_18 : f32 to vector<1x128xf32>
      %c0_19 = arith.constant 0 : index
      %c0_20 = arith.constant 0 : index
      %54 = vector.load %arg5[%c0_19, %c0_20] : memref<1x128xf32, #tpu.memory_space<vmem>>, vector<1x128xf32>
      tpu.vector_store %arg5[%c0_19, %c0_20], %53 {strides = array<i32>} : memref<1x128xf32, #tpu.memory_space<vmem>>, vector<1x128xf32>,
    } else {
    }
    %c0 = arith.constant 0 : index
    %c0_1 = arith.constant 0 : index
    %3 = vector.load %arg2[%c0, %c0_1] : memref<32x128xf32, #tpu.memory_space<vmem>>, vector<32x128xf32>
    %c0_2 = arith.constant 0 : index
    %c0_3 = arith.constant 0 : index
    %4 = vector.load %arg3[%c0_2, %c0_3] : memref<32x128xi8, #tpu.memory_space<vmem>>, vector<32x128xi8>
    %5 = arith.sitofp %4 : vector<32x128xi8> to vector<32x128xf32>
    %cst = arith.constant dense<0xFF800000> : vector<128xf32>
    %6 = vector.multi_reduction <maximumf>, %3, %cst [0] : vector<32x128xf32> to vector<128xf32>
    %7 = vector.shape_cast %6 : vector<128xf32> to vector<1x128xf32>
    %8 = vector.broadcast %7 : vector<1x128xf32> to vector<32x128xf32>
    %9 = arith.subf %3, %8 : vector<32x128xf32>
    %10 = math.exp %9 : vector<32x128xf32>
    %cst_4 = arith.constant dense<0.000000e+00> : vector<128xf32>
    %11 = vector.multi_reduction <add>, %10, %cst_4 [0] : vector<32x128xf32> to vector<128xf32>
    %12 = vector.shape_cast %11 : vector<128xf32> to vector<1x128xf32>
    %13 = math.log %12 : vector<1x128xf32>
    %14 = arith.addf %13, %7 : vector<1x128xf32>
    %15 = arith.mulf %3, %5 : vector<32x128xf32>
    %cst_5 = arith.constant dense<0xFF800000> : vector<128xf32>
    %16 = vector.multi_reduction <maximumf>, %15, %cst_5 [0] : vector<32x128xf32> to vector<128xf32>
    %17 = vector.shape_cast %16 : vector<128xf32> to vector<1x128xf32>
    %cst_6 = arith.constant 0.000000e+00 : f32
    %18 = vector.broadcast %cst_6 : f32 to vector<1x128xf32>
    %19 = arith.maximumf %17, %18 : vector<1x128xf32>
    %20 = vector.broadcast %19 : vector<1x128xf32> to vector<32x128xf32>
    %21 = arith.subf %3, %20 : vector<32x128xf32>
    %22 = arith.mulf %21, %5 : vector<32x128xf32>
    %23 = math.exp %22 : vector<32x128xf32>
    %24 = arith.mulf %23, %5 : vector<32x128xf32>
    %cst_7 = arith.constant dense<0.000000e+00> : vector<128xf32>
    %25 = vector.multi_reduction <add>, %24, %cst_7 [0] : vector<32x128xf32> to vector<128xf32>
    %26 = vector.shape_cast %25 : vector<128xf32> to vector<1x128xf32>
    %27 = math.log %26 : vector<1x128xf32>
    %28 = arith.addf %27, %19 : vector<1x128xf32>
    %cst_8 = arith.constant dense<0.000000e+00> : vector<128xf32>
    %29 = vector.multi_reduction <add>, %15, %cst_8 [0] : vector<32x128xf32> to vector<128xf32>
    %30 = vector.shape_cast %29 : vector<128xf32> to vector<1x128xf32>
    %cst_9 = arith.constant dense<0.000000e+00> : vector<128xf32>
    %31 = vector.multi_reduction <add>, %5, %cst_9 [0] : vector<32x128xf32> to vector<128xf32>
    %32 = vector.shape_cast %31 : vector<128xf32> to vector<1x128xf32>
    %cst_10 = arith.constant 1.000000e+00 : f32
    %33 = vector.broadcast %cst_10 : f32 to vector<1x128xf32>
    %34 = arith.cmpf ogt, %32, %33 : vector<1x128xf32>
    %35 = arith.select %34, %28, %30 : vector<1x128xi1>, vector<1x128xf32>
    %36 = arith.subf %35, %14 : vector<1x128xf32>
    %c1_i32 = arith.constant 1 : i32
    %37 = arith.muli %arg0, %c1_i32 : i32
    %38 = arith.addi %37, %arg1 : i32
    %39 = tpu.iota {dimensions = array<i32: 1>} : vector<1x128xi32>
    %c128_i32 = arith.constant 128 : i32
    %40 = arith.muli %38, %c128_i32 : i32
    %41 = vector.broadcast %40 : i32 to vector<1x128xi32>
    %42 = arith.addi %39, %41 : vector<1x128xi32>
    %c8_i32 = arith.constant 8 : i32
    %43 = vector.broadcast %c8_i32 : i32 to vector<1x128xi32>
    %44 = arith.cmpi slt, %42, %43 : vector<1x128xi32>
    %cst_11 = arith.constant 0.000000e+00 : f32
    %45 = vector.broadcast %cst_11 : f32 to vector<1x128xf32>
    %46 = arith.select %44, %36, %45 : vector<1x128xi1>, vector<1x128xf32>
    %c0_12 = arith.constant 0 : index
    %c0_13 = arith.constant 0 : index
    %47 = vector.load %arg5[%c0_12, %c0_13] : memref<1x128xf32, #tpu.memory_space<vmem>>, vector<1x128xf32>
    %48 = arith.addf %47, %46 : vector<1x128xf32>
    %c0_14 = arith.constant 0 : index
    %c0_15 = arith.constant 0 : index
    %49 = vector.load %arg5[%c0_14, %c0_15] : memref<1x128xf32, #tpu.memory_space<vmem>>, vector<1x128xf32>
    tpu.vector_store %arg5[%c0_14, %c0_15], %48 {strides = array<i32>} : memref<1x128xf32, #tpu.memory_space<vmem>>, vector<1x128xf32>,
    %c0_i32_16 = arith.constant 0 : i32
    %50 = arith.cmpi eq, %arg1, %c0_i32_16 : i32
    %51 = arith.extui %50 : i1 to i32
    %c0_i32_17 = arith.constant 0 : i32
    %52 = arith.cmpi ne, %51, %c0_i32_17 : i32
    scf.if %52 {
      %c0_18 = arith.constant 0 : index
      %c0_19 = arith.constant 0 : index
      %53 = vector.load %arg5[%c0_18, %c0_19] : memref<1x128xf32, #tpu.memory_space<vmem>>, vector<1x128xf32>
      %54 = vector.shape_cast %53 : vector<1x128xf32> to vector<1x1x128xf32>
      %cst_20 = arith.constant dense<0.000000e+00> : vector<1xf32>
      %55 = vector.multi_reduction <add>, %54, %cst_20 [1, 2] : vector<1x1x128xf32> to vector<1xf32>
      %56 = vector.shape_cast %55 : vector<1xf32> to vector<1x1x1xf32>
      %57 = vector.extract %56[0, 0, 0] : f32 from vector<1x1x1xf32>
      %58 = vector.broadcast %57 : f32 to vector<1x128xf32>
      %c0_21 = arith.constant 0 : index
      %c0_22 = arith.constant 0 : index
      %59 = vector.load %arg4[%c0_21, %c0_22] : memref<1x128xf32, #tpu.memory_space<vmem>>, vector<1x128xf32>
      tpu.vector_store %arg4[%c0_21, %c0_22], %58 {strides = array<i32>} : memref<1x128xf32, #tpu.memory_space<vmem>>, vector<1x128xf32>,
    } else {
    }
    return
  }
  func.func @transform_0(%arg0: i32, %arg1: i32) -> (i32, i32) {
    %c1_i32 = arith.constant 1 : i32
    %0 = arith.muli %arg0, %c1_i32 : i32
    %1 = arith.addi %0, %arg1 : i32
    %c0_i32 = arith.constant 0 : i32
    %2 = arith.minsi %1, %c0_i32 : i32
    %c0_i32_0 = arith.constant 0 : i32
    %c0_i32_1 = arith.constant 0 : i32
    return %c0_i32_0, %2 : i32, i32
  }
  func.func @transform_1(%arg0: i32, %arg1: i32) -> (i32, i32) {
    %c1_i32 = arith.constant 1 : i32
    %0 = arith.muli %arg0, %c1_i32 : i32
    %1 = arith.addi %0, %arg1 : i32
    %c0_i32 = arith.constant 0 : i32
    %2 = arith.minsi %1, %c0_i32 : i32
    %c0_i32_0 = arith.constant 0 : i32
    %c0_i32_1 = arith.constant 0 : i32
    return %c0_i32_0, %2 : i32, i32
  }
  func.func @transform_2(%arg0: i32, %arg1: i32) -> (i32, i32) {
    %c0_i32 = arith.constant 0 : i32
    %c0_i32_0 = arith.constant 0 : i32
    return %c0_i32, %arg0 : i32, i32
  }
}

</mosaic_0001>

<bundles_post_ra>
// kernel: likelihood_mtlr.1
= control target key start
LH: loop header
LB: loop body
LE: loop exit
PB: predicated region body
PF: predicated region fallthrough
CT: control target
= control target key end

     0   :  { %s536_s9 = smov 0   ;;  %s538_s10 = smov 0   ;;  %s625_s0 = inlined_call_operand.vmem [shape: f32[32,8], index: 0, kind: input, shape index: {}]   ;;  %s626_s1 = inlined_call_operand.vmem [shape: s8[32,8], index: 1, kind: input, shape index: {}]   ;;  %s627_s2 = inlined_call_operand.vmem [shape: f32[1,256], index: 2, kind: output, shape index: {}]  }
   0x1   :  { %s540_s11 = smov 0  }
   0x2 LB: > { %s24_s12 = sadd.s32 1, %s514_s10  ;;  %p428_p0 = scmp.ge.s32.totalorder %s518_s11, 1  ;;  %s518_s11 = sphi %s540_s11, %s12_s11   ;;  %s514_s10 = sphi %s538_s10, %s629_s10   ;;  %s510_s9 = sphi %s536_s9, %s628_s9  }
   0x3   : > { %p26_p1 = scmp.ge.s32.totalorder %s24_s12, 2  ;;  %p156_p2 = scmp.lt.s32.totalorder %s518_s11, 3 }
   0x5   : > { %s631_s12 = smov (%p26_p1, %s24_s12), 0  ;;  %p157_p3 = pnand %p428_p0, %p156_p2 }
   0x6   : > { %p186_p4 = scmp.lt.s32.totalorder (!%p157_p3), %s510_s9, 0  ;;  %v520_v0 = vmov (!%p157_p3), 0.0   ;;  %s437_s22 = sshll.u32 (!%p157_p3), %s510_s9, 7  ;;  %vm344_vm2 = vcmask (!%p157_p3), 1040384  }
   0x7   : > { %160 = sbr.rel (%p157_p3) target bundleno = 319 (0x13f), region = 28  ;;  %212 = vst [vmem:[#allocation2] sm:$0x1] (!%p157_p3), %v520_v0  ;;  %p205_p5 = scmp.lt.s32.totalorder (!%p157_p3), %s510_s9, 1 }
   0xe   : > { %s187_s13 = scalar_select %p186_p4, %s510_s9, 0 }
   0xf   : > { %s635_s9 = smov (!%p205_p5, %s510_s9), 1 }
  0x10   : > { %s633_s13 = smov (!%p186_p4, %s187_s13), 0  ;;  %s207_s25 = scalar_lea.vmem %s627_s2, %s635_s9 }
  0x11   : > { %s432_s14 = sshll.u32 %s633_s13, 3  ;;  %s436_s15 = sshll.u32 %s633_s13, 1 }
  0x12   : > { %s191_s18 = scalar_lea.vmem %s625_s0, %s432_s14  ;;  %s201_s21 = scalar_lea.vmem %s626_s1, %s436_s15 }
  0x13   : > { %v213_v1 = vld [vmem:[%s191_s18] sm:$0xff]  ;;  %v214_v2 = vld [vmem:[%s191_s18 + $0x8] sm:$0xff]  ;;  %v215_v5 = vld [vmem:[%s191_s18 + $0x10] sm:$0xff] }
  0x14   : > { %v441_v3 = vld [vmem:[%s201_s21] sm:$0xff]   ;;  %v229_v4 = vmax.f32 %v213_v1, %v214_v2  ;;  %v216_v6 = vld [vmem:[%s191_s18 + $0x18] sm:$0xff] }
  0x15   : > { %v442_v7 = vunpack.c.0.s8 %v441_v3  ;;  %v443_v8 = vunpack.c.1.s8 %v441_v3  ;;  %v446_v9 = vunpack.c.2.s8 %v441_v3  ;;  %v447_v10 = vunpack.c.3.s8 %v441_v3 }
  0x16   : > { %v230_v11 = vmax.f32 %v215_v5, %v216_v6 }
  0x17   : > { %v564_v12 = vcvt.s32.f32 %v442_v7  ;;  %v566_v13 = vcvt.s32.f32 %v443_v8  ;;  %v568_v14 = vcvt.s32.f32 %v446_v9  ;;  %v570_v15 = vcvt.s32.f32 %v447_v10 }
  0x18   : > { %v231_v16 = vmax.f32 %v229_v4, %v230_v11 }
  0x19   : > { %v262_v17 = vmul.f32 %v564_v12, %v213_v1  ;;  %v263_v18 = vmul.f32 %v566_v13, %v214_v2  ;;  %v575_v19 = vmul.f32 %v568_v14, %v215_v5  ;;  %v578_v20 = vmul.f32 %v570_v15, %v216_v6 }
  0x1a   : > { %v232_v21 = vrot.slane %v231_v16, 4  ;;  %v317_v0 = vadd.f32 %v566_v13, %v564_v12 }
  0x1b   : > { %v266_v22 = vmax.f32 %v262_v17, %v263_v18  ;;  %v267_v23 = vmax.f32 %v575_v19, %v578_v20 }
  0x1c   : > { %v233_v24 = vmax.f32 %v231_v16, %v232_v21  ;;  %v318_v9 = vadd.f32 %v317_v0, %v568_v14 }
  0x1d   : > { %v268_v25 = vmax.f32 %v266_v22, %v267_v23 }
  0x1e   : > { %v234_v26 = vrot.slane %v233_v24, 2 }
  0x1f   : > { %v269_v27 = vrot.slane %v268_v25, 4 }
  0x20   : > { %v235_v28 = vmax.f32 %v233_v24, %v234_v26  ;;  %v319_v26 = vadd.f32 %v318_v9, %v570_v15 }
  0x21   : > { %v270_v29 = vmax.f32 %v268_v25, %v269_v27 }
  0x22   : > { %v236_v30 = vrot.slane %v235_v28, 1  ;;  %v320_v27 = vrot.slane %v319_v26, 4 }
  0x23   : > { %v271_v31 = vrot.slane %v270_v29, 2 }
  0x24   : > { %v582_v32 = vmax.f32 %v235_v28, %v236_v30 }
  0x25   : > { %v272_v33 = vmax.f32 %v270_v29, %v271_v31  ;;  %v321_v31 = vadd.f32 %v320_v27, %v319_v26 }
  0x26   : > { %v238_v34 = vsub.f32 %v213_v1, %v582_v32  ;;  %v239_v35 = vsub.f32 %v214_v2, %v582_v32  ;;  %v240_v36 = vsub.f32 %v215_v5, %v582_v32  ;;  %v241_v37 = vsub.f32 %v216_v6, %v582_v32 }
  0x27   : > { %v273_v38 = vrot.slane %v272_v33, 1 }
  0x28   : > { %v242_v39 = vmul.f32 1.442695, %v238_v34  ;;  %v244_v40 = vmul.f32 1.442695, %v239_v35  ;;  %v246_v41 = vmul.f32 1.442695, %v240_v36 }
  0x29   : > { %v248_v42 = vmul.f32 1.442695, %v241_v37  ;;  %v274_v43 = vmax.f32 %v272_v33, %v273_v38 }
  0x2a   : > { %476 = vpow2.f32 %v242_v39  ;;  %v330_v39 = vlaneseq }
  0x2b   : > { %478 = vpow2.f32 %v244_v40  ;;  %v588_v44 = vmax.f32 %v274_v43, 0.0 }
  0x2c   : > { %480 = vpow2.f32 %v246_v41 }
  0x2d   : > { %482 = vpow2.f32 %v248_v42  ;;  %v276_v45 = vsub.f32 %v213_v1, %v588_v44  ;;  %v277_v46 = vsub.f32 %v214_v2, %v588_v44  ;;  %v278_v47 = vsub.f32 %v215_v5, %v588_v44 }
  0x2e   : > { %v279_v48 = vsub.f32 %v216_v6, %v588_v44  ;;  %v308_v6 = vadd.f32 %v263_v18, %v262_v17  ;;  %v331_v42 = vand.u32 127, %v330_v39 }
  0x2f   : > { %v280_v49 = vmul.f32 %v276_v45, %v564_v12  ;;  %v281_v50 = vmul.f32 %v277_v46, %v566_v13  ;;  %v282_v51 = vmul.f32 %v278_v47, %v568_v14  ;;  %v333_v46 = vstv %s437_s22 }
  0x30   : > { %v283_v52 = vmul.f32 %v279_v48, %v570_v15  ;;  %v309_v24 = vadd.f32 %v308_v6, %v575_v19  ;;  %v322_v19 = vrot.slane %v321_v31, 2 }
  0x31   : > { %v284_v53 = vmul.f32 1.442695, %v280_v49  ;;  %v286_v54 = vmul.f32 1.442695, %v281_v50  ;;  %v288_v55 = vmul.f32 1.442695, %v282_v51  ;;  %v334_v50 = vadd.s32 %v333_v46, %v331_v42 }
  0x32   : > { %v290_v56 = vmul.f32 1.442695, %v283_v52  ;;  %v310_v18 = vadd.f32 %v309_v24, %v578_v20 }
  0x33   : > { %484 = vpow2.f32 %v284_v53  ;;  %vm335_vm1 = vcmp.lt.s32.totalorder %v334_v50, 8 }
  0x34   : > { %v477_v57 = vpop.eup %476  ;;  %486 = vpow2.f32 %v286_v54  ;;  %v311_v30 = vrot.slane %v310_v18, 4 }
  0x35   : > { %v479_v58 = vpop.eup %478  ;;  %488 = vpow2.f32 %v288_v55  ;;  %v337_v55 = vld [vmem:[#allocation2] sm:$0x1] }
  0x36   : > { %v481_v59 = vpop.eup %480  ;;  %v250_v60 = vadd.f32 %v479_v58, %v477_v57  ;;  %490 = vpow2.f32 %v290_v56  ;;  %v312_v34 = vadd.f32 %v311_v30, %v310_v18 }
  0x37   : > { %v483_v61 = vpop.eup %482 }
  0x38   : > { %v251_v62 = vadd.f32 %v481_v59, %v250_v60  ;;  %v313_v37 = vrot.slane %v312_v34, 2 }
  0x3a   : > { %v252_v63 = vadd.f32 %v483_v61, %v251_v62  ;;  %v314_v38 = vadd.f32 %v313_v37, %v312_v34 }
  0x3c   : > { %v253_v1 = vrot.slane %v252_v63, 4  ;;  %v315_v41 = vrot.slane %v314_v38, 1 }
  0x3d   : > { %v485_v2 = vpop.eup %484 }
  0x3e   : > { %v487_v3 = vpop.eup %486  ;;  %v254_v4 = vadd.f32 %v253_v1, %v252_v63  ;;  %v292_v5 = vmul.f32 %v485_v2, %v564_v12  ;;  %v316_v49 = vadd.f32 %v315_v41, %v314_v38 }
  0x3f   : > { %v489_v7 = vpop.eup %488  ;;  %v293_v8 = vmul.f32 %v487_v3, %v566_v13 }
  0x40   : > { %v491_v10 = vpop.eup %490  ;;  %v255_v11 = vrot.slane %v254_v4, 2  ;;  %v294_v16 = vmul.f32 %v489_v7, %v568_v14 }
  0x41   : > { %v295_v21 = vmul.f32 %v491_v10, %v570_v15  ;;  %v296_v22 = vadd.f32 %v293_v8, %v292_v5  ;;  %v323_v15 = vadd.f32 %v322_v19, %v321_v31 }
  0x42   : > { %v256_v23 = vadd.f32 %v255_v11, %v254_v4 }
  0x43   : > { %v297_v25 = vadd.f32 %v296_v22, %v294_v16  ;;  %v324_v20 = vrot.slane %v323_v15, 1 }
  0x44   : > { %v257_v17 = vrot.slane %v256_v23, 1 }
  0x45   : > { %v298_v12 = vadd.f32 %v297_v25, %v295_v21  ;;  %v325_v45 = vadd.f32 %v324_v20, %v323_v15 }
  0x46   : > { %v258_v29 = vadd.f32 %v257_v17, %v256_v23 }
  0x47   : > { %v299_v13 = vrot.slane %v298_v12, 4  ;;  %vm326_vm0 = vcmp.gt.f32.partialorder %v325_v45, 1.0 }
  0x48   : > { %492 = vlog2.f32 %v258_v29 }
  0x49   : > { %v300_v28 = vadd.f32 %v299_v13, %v298_v12 }
  0x4b   : > { %v301_v14 = vrot.slane %v300_v28, 2 }
  0x4d   : > { %v302_v33 = vadd.f32 %v301_v14, %v300_v28 }
  0x4f   : > { %v303_v35 = vrot.slane %v302_v33, 1 }
  0x51   : > { %v304_v36 = vadd.f32 %v303_v35, %v302_v33 }
  0x52   : > { %v493_v40 = vpop.eup %492 }
  0x53   : > { %494 = vlog2.f32 %v304_v36  ;;  %v260_v43 = vmul.f32 0.6931472, %v493_v40 }
  0x55   : > { %v261_v51 = vadd.f32 %v260_v43, %v582_v32 }
  0x5d   : > { %v495_v47 = vpop.eup %494 }
  0x5e   : > { %v306_v48 = vmul.f32 0.6931472, %v495_v47 }
  0x60   : > { %v307_v52 = vadd.f32 %v306_v48, %v588_v44 }
  0x62   : > { %v327_v53 = vsel %vm326_vm0, %v307_v52, %v316_v49 }
  0x63   : > { %v328_v54 = vsub.f32 %v327_v53, %v261_v51 }
  0x65   : > { %v336_v56 = vsel %vm335_vm1, %v328_v54, 0.0 }
  0x66   : > { %v338_v57 = vadd.f32 %v337_v55, %v336_v56 }
  0x68   : > { %339 = vst [vmem:[#allocation2] sm:$0x1] %v338_v57 }
  0x6f   : > { %v343_v58 = vld [vmem:[#allocation2] sm:$0x1] }
  0x70   : > { %v345_v59 = vsel %vm344_vm2, %v343_v58, 0.0 }
  0x71   : > { %346 = vadd.xlane.f32.xlu0 %v345_v59 }
  0xfe   : > { %v347_v60 = vpop.xlane.xlu0 %346 }
  0xff   : > { %v348_v61 = vrot.slane %v347_v60, 4 }
 0x101   : > { %v349_v62 = vadd.f32 %v348_v61, %v347_v60 }
 0x103   : > { %v350_v32 = vrot.slane %v349_v62, 2 }
 0x105   : > { %v351_v63 = vadd.f32 %v350_v32, %v349_v62 }
 0x107   : > { %v352_v0 = vrot.slane %v351_v63, 1 }
 0x109   : > { %v353_v44 = vadd.f32 %v352_v0, %v351_v63 }
 0x10b   : > { %449 = vpush %v353_v44 }
 0x13c   : > { %s450_s26 = spop %449 }
 0x13d   : > { %v355_v1 = vstv %s450_s26 }
 0x13e   : > { %356 = vst [vmem:[%s207_s25] sm:$0x1] %v355_v1 }
 0x13f PF: > { %s12_s11 = sadd.s32 1, %s518_s11   ;;  %s628_s9 = smov %s514_s10 }
 0x140   : > { %p9_p6 = scmp.ge.s32.totalorder %s12_s11, 4   ;;  %s629_s10 = smov %s631_s12 }
 0x142   :  { %11 = sbr.rel (!%p9_p6) target bundleno = 2 (0x2), region = 69 }

</bundles_post_ra>
